<compile_context>
chip_gen: v5e
topology: v5e:2x2
jax: 0.10.0
libtpu: 0.0.40
codegen_flags: <defaults>
</compile_context>

<pallas_src>
import functools

import jax
import jax.numpy as jnp
from jax import lax
from jax.experimental import pallas as pl
from jax.experimental.pallas import tpu as pltpu


def _mha_kernel(x_ref, wq_ref, wkv_ref, o_ref, kv_ref, *, n_heads, head_size, tq):
    # x_ref   : (Tp, E)       full (padded) sequence for batch element b
    # wq_ref  : (E, nH)       packed Q weights, pre-scaled by H**-0.5
    # wkv_ref : (E, 2*nH)     packed [K_all | V_all] weights
    # o_ref   : (tq, H)       head-summed output for query tile qi
    # kv_ref  : (Tp, 2*nH)    bf16 VMEM scratch caching the K/V projection
    qi = pl.program_id(1)
    H = head_size
    nH = n_heads * H

    # K/V projection: computed once per batch element (qi == 0), cached in
    # VMEM and reused by all subsequent query tiles (qi axis is "arbitrary",
    # so iteration over qi is sequential within each b).
    @pl.when(qi == 0)
    def _():
        kv = jnp.dot(x_ref[...], wkv_ref[...], preferred_element_type=jnp.float32)
        kv_ref[...] = kv.astype(kv_ref.dtype)               # bf16 store

    # Q projection for this query tile, sliced from the resident x block
    # (no duplicate query DMA stream). f32 accumulation, then bf16 for the MXU.
    q_start = pl.multiple_of(qi * tq, tq)
    x_q = x_ref[pl.ds(q_start, tq), :]                       # (tq, E)
    q = jnp.dot(x_q, wq_ref[...], preferred_element_type=jnp.float32)  # (tq, nH)
    q = q.astype(jnp.bfloat16)

    row = lax.broadcasted_iota(jnp.int32, (tq, tq), 0) + qi * tq
    col = lax.broadcasted_iota(jnp.int32, (tq, tq), 1)
    neg = jnp.float32(-1e30)                                  # finite, NaN-safe floor

    def kv_step(kvi, carry):
        k_start = pl.multiple_of(kvi * tq, tq)
        kv_tile = kv_ref[pl.ds(k_start, tq), :]               # (tq, 2*nH) bf16
        mask = (col + kvi * tq) <= row                        # all-True for kvi < qi
        new_carry = []
        for h in range(n_heads):                              # static unroll; n_heads small
            m_h, l_h, acc_h = carry[h]
            k_h = kv_tile[:, h * H:(h + 1) * H]               # (tq, H) bf16
            v_h = kv_tile[:, nH + h * H:nH + (h + 1) * H]     # (tq, H) bf16
            # scores: contract head dim directly; bf16 operands, f32 accumulation
            s = lax.dot_general(q[:, h * H:(h + 1) * H], k_h,
                                (((1,), (1,)), ((), ())),
                                preferred_element_type=jnp.float32)   # (tq, tq)
            s = jnp.where(mask, s, neg)
            m_new = jnp.maximum(m_h, jnp.max(s, axis=-1, keepdims=True))
            alpha = jnp.exp(m_h - m_new)
            p = jnp.exp(s - m_new)                            # masked cols -> 0
            l_new = alpha * l_h + jnp.sum(p, axis=-1, keepdims=True)
            pv = jnp.dot(p.astype(jnp.bfloat16), v_h,
                         preferred_element_type=jnp.float32)  # (tq, H) f32
            new_carry.append((m_new, l_new, alpha * acc_h + pv))
        return tuple(new_carry)

    init = tuple((jnp.full((tq, 1), neg, jnp.float32),
                  jnp.zeros((tq, 1), jnp.float32),
                  jnp.zeros((tq, H), jnp.float32)) for _ in range(n_heads))
    # Causal tile skipping: only kv tiles 0..qi contain unmasked keys (tk == tq).
    carry = lax.fori_loop(0, qi + 1, kv_step, init)

    # Head sum in f32 inside the kernel; exact division for the softmax denom.
    y = jnp.zeros((tq, H), jnp.float32)
    for h in range(n_heads):
        _, l_h, acc_h = carry[h]
        y = y + acc_h / l_h
    o_ref[...] = y.astype(o_ref.dtype)


def _preferred_q_tile():
    # v5e MXU is 4x128x128 -> M = 128 tiles; v6e/v7x MXU is 2x256x256 -> 256.
    try:
        kind = jax.devices()[0].device_kind.lower()
    except Exception:
        kind = ""
    return 128 if "v5" in kind else 256


def _round_up(x, m):
    return ((x + m - 1) // m) * m


def multi_head_forward(x, wk, wq, wv):
    """
    x : (B, T, E)
    wk, wq, wv : (n_heads, E, H)  per-head nn.Linear weights, already transposed
                                  so the kernel computes x @ W.
    returns (B, T, H) -- sum over heads of per-head causal attention outputs.
    """
    B, T, E = x.shape
    n_heads, _, H = wk.shape
    nH = n_heads * H

    # Pack per-head weights into lane-dense matrices; fold 1/sqrt(H) into Wq.
    def pack(w):
        return jnp.transpose(w, (1, 0, 2)).reshape(E, nH)

    scale = jnp.asarray(H, jnp.float32) ** -0.5
    wq_packed = (pack(wq) * scale).astype(wq.dtype)              # (E, nH)
    wkv_packed = jnp.concatenate([pack(wk), pack(wv)], axis=1)   # (E, 2*nH)

    # Query/kv tile (tk == tq); pad T so every tile is full (multiple of 8).
    tq = min(_preferred_q_tile(), _round_up(T, 8))
    nq = pl.cdiv(T, tq)
    Tp = nq * tq
    x_in = jnp.pad(x, ((0, 0), (0, Tp - T), (0, 0))) if Tp != T else x

    # Explicit VMEM budget (raises v5e's 16 MiB default, stays <= v7x's 64 MiB).
    itemsize = x.dtype.itemsize
    vmem_needed = int(
        2 * Tp * E * itemsize            # x block (double-buffered)
        + 2 * E * nH * itemsize          # Wq block
        + 2 * E * 2 * nH * itemsize      # Wkv block
        + 2 * tq * H * itemsize          # output block
        + Tp * 2 * nH * (2 + 4)          # bf16 kv scratch + f32 projection temp
        + tq * (nH + n_heads * tq) * 4   # q + live score tiles
    )
    vmem_limit = min(max(2 * vmem_needed + (2 << 20), 32 << 20), 64 << 20)

    out = pl.pallas_call(
        functools.partial(_mha_kernel, n_heads=n_heads, head_size=H, tq=tq),
        out_shape=jax.ShapeDtypeStruct((B, Tp, H), x.dtype),
        grid_spec=pltpu.PrefetchScalarGridSpec(
            num_scalar_prefetch=0,
            grid=(B, nq),
            in_specs=[
                pl.BlockSpec((None, Tp, E), lambda b, qi: (b, 0, 0)),   # x (K/V + Q src)
                pl.BlockSpec((E, nH), lambda b, qi: (0, 0)),            # Wq packed
                pl.BlockSpec((E, 2 * nH), lambda b, qi: (0, 0)),        # Wkv packed
            ],
            out_specs=pl.BlockSpec((None, tq, H), lambda b, qi: (b, qi, 0)),
            scratch_shapes=[pltpu.VMEM((Tp, 2 * nH), jnp.bfloat16)],    # kv cache
        ),
        compiler_params=pltpu.CompilerParams(
            dimension_semantics=("parallel", "arbitrary"),
            vmem_limit_bytes=vmem_limit,
        ),
    )(x_in, wq_packed, wkv_packed)

    return out[:, :T, :]


def _reference(x, wk, wq, wv):
    # plain-JAX reference matching the PyTorch module semantics
    K = jnp.einsum("bte,hed->bhtd", x, wk)
    Q = jnp.einsum("bte,hed->bhtd", x, wq)
    V = jnp.einsum("bte,hed->bhtd", x, wv)
    d = K.shape[-1]
    A = jnp.einsum("bhtd,bhsd->bhts", Q, K) * d ** (-0.5)
    T = x.shape[1]
    mask = jnp.tril(jnp.ones((T, T), dtype=bool))
    A = jnp.where(mask[None, None], A, -jnp.inf)
    A = jax.nn.softmax(A, axis=-1)
    Y = jnp.einsum("bhts,bhsd->bhtd", A, V)
    return jnp.sum(Y, axis=1)  # sum over heads (torch.stack + torch.sum(dim=0))


if __name__ == "__main__":
    # small shapes consistent with the module
    B, n, n_embedding, n_heads, head_size = 2, 8, 32, 4, 16
    dropout = 0.0  # identity in eval mode

    key = jax.random.PRNGKey(0)
    kx, kk, kq, kv = jax.random.split(key, 4)

    x = jax.random.normal(kx, (B, n, n_embedding), dtype=jnp.float32)
    # nn.Linear(n_embedding, head_size, bias=False) weight is (head_size, E);
    # store transposed (E, head_size) per head so the kernel does x @ W.
    scale = 1.0 / jnp.sqrt(jnp.float32(n_embedding))
    wk = jax.random.uniform(kk, (n_heads, n_embedding, head_size),
                            minval=-scale, maxval=scale, dtype=jnp.float32)
    wq = jax.random.uniform(kq, (n_heads, n_embedding, head_size),
                            minval=-scale, maxval=scale, dtype=jnp.float32)
    wv = jax.random.uniform(kv, (n_heads, n_embedding, head_size),
                            minval=-scale, maxval=scale, dtype=jnp.float32)

    out = multi_head_forward(x, wk, wq, wv)
    out = jax.block_until_ready(out)

    ref = _reference(x, wk, wq, wv)
    assert out.shape == (B, n, head_size)
    # bf16 operands on the score / P@V matmuls (f32 accumulation) put the error
    # at the ~1e-3 level vs. the exact f32 reference.
    assert jnp.allclose(out, ref, atol=2e-2, rtol=2e-2), "mismatch vs reference"

    print("KERNEL_OK")
</pallas_src>

<mosaic_0001>
module attributes {stable_mosaic.version = 11 : i64} {
  func.func @_mha_kernel(%arg0: i32, %arg1: i32, %arg2: memref<1x8x32xf32, #tpu.memory_space<vmem>>, %arg3: memref<32x64xf32, #tpu.memory_space<vmem>>, %arg4: memref<32x128xf32, #tpu.memory_space<vmem>>, %arg5: memref<1x8x16xf32, #tpu.memory_space<vmem>>, %arg6: memref<8x128xbf16, #tpu.memory_space<vmem>>) attributes {dimension_semantics = [#tpu.dimension_semantics<parallel>, #tpu.dimension_semantics<arbitrary>], iteration_bounds = array<i64: 2, 1>, scalar_prefetch = 0 : i64, scratch_operands = 1 : i64, tpu.core_type = #tpu.core_type<tc>, window_params = [{transform_indices = @transform_0, window_bounds = array<i64: 1, 8, 32>}, {pipeline_mode = #tpu.pipeline_mode<synchronous>, transform_indices = @transform_1, window_bounds = array<i64: 32, 64>}, {pipeline_mode = #tpu.pipeline_mode<synchronous>, transform_indices = @transform_2, window_bounds = array<i64: 32, 128>}, {transform_indices = @transform_3, window_bounds = array<i64: 1, 8, 16>}]} {
    %c0_i32 = arith.constant 0 : i32
    %0 = arith.cmpi eq, %arg1, %c0_i32 : i32
    %1 = arith.extui %0 : i1 to i32
    %c0_i32_0 = arith.constant 0 : i32
    %2 = arith.cmpi ne, %1, %c0_i32_0 : i32
    scf.if %2 {
      %c0_24 = arith.constant 0 : index
      %c0_25 = arith.constant 0 : index
      %c0_26 = arith.constant 0 : index
      %48 = vector.load %arg2[%c0_24, %c0_25, %c0_26] : memref<1x8x32xf32, #tpu.memory_space<vmem>>, vector<1x8x32xf32>
      %49 = vector.shape_cast %48 : vector<1x8x32xf32> to vector<8x32xf32>
      %c0_27 = arith.constant 0 : index
      %c0_28 = arith.constant 0 : index
      %50 = vector.load %arg4[%c0_27, %c0_28] : memref<32x128xf32, #tpu.memory_space<vmem>>, vector<32x128xf32>
      %cst_29 = arith.constant dense<0.000000e+00> : vector<8x128xf32>
      %51 = tpu.matmul %49, %50, %cst_29 {dimension_numbers = #tpu.dot_dimension_numbers<[1], [0], [0], [1], [0, 0, 1, 1], [], []>} : vector<8x32xf32>, vector<32x128xf32>, vector<8x128xf32> -> vector<8x128xf32>
      %52 = arith.truncf %51 : vector<8x128xf32> to vector<8x128xbf16>
      %c0_30 = arith.constant 0 : index
      %c0_31 = arith.constant 0 : index
      %53 = vector.load %arg6[%c0_30, %c0_31] : memref<8x128xbf16, #tpu.memory_space<vmem>>, vector<8x128xbf16>
      tpu.vector_store %arg6[%c0_30, %c0_31], %52 {strides = array<i32>} : memref<8x128xbf16, #tpu.memory_space<vmem>>, vector<8x128xbf16>,
    } else {
    }
    %c8_i32 = arith.constant 8 : i32
    %3 = arith.muli %arg1, %c8_i32 : i32
    %4 = tpu.assume_multiple %3, 8 : i32
    %c0 = arith.constant 0 : index
    %5 = arith.index_cast %4 : i32 to index
    %c0_1 = arith.constant 0 : index
    %6 = vector.load %arg2[%c0, %5, %c0_1] : memref<1x8x32xf32, #tpu.memory_space<vmem>>, vector<1x8x32xf32>
    %7 = vector.shape_cast %6 : vector<1x8x32xf32> to vector<8x32xf32>
    %c0_2 = arith.constant 0 : index
    %c0_3 = arith.constant 0 : index
    %8 = vector.load %arg3[%c0_2, %c0_3] : memref<32x64xf32, #tpu.memory_space<vmem>>, vector<32x64xf32>
    %cst = arith.constant dense<0.000000e+00> : vector<8x64xf32>
    %9 = tpu.matmul %7, %8, %cst {dimension_numbers = #tpu.dot_dimension_numbers<[1], [0], [0], [1], [0, 0, 1, 1], [], []>} : vector<8x32xf32>, vector<32x64xf32>, vector<8x64xf32> -> vector<8x64xf32>
    %10 = arith.truncf %9 : vector<8x64xf32> to vector<8x64xbf16>
    %11 = tpu.iota {dimensions = array<i32: 0>} : vector<8x8xi32>
    %c8_i32_4 = arith.constant 8 : i32
    %12 = arith.muli %arg1, %c8_i32_4 : i32
    %13 = vector.broadcast %12 : i32 to vector<8x8xi32>
    %14 = arith.addi %11, %13 : vector<8x8xi32>
    %15 = tpu.iota {dimensions = array<i32: 1>} : vector<8x8xi32>
    %cst_5 = arith.constant -1.000000e+30 : f32
    %16 = vector.broadcast %cst_5 : f32 to vector<8x1xf32>
    %cst_6 = arith.constant 0.000000e+00 : f32
    %17 = vector.broadcast %cst_6 : f32 to vector<8x1xf32>
    %cst_7 = arith.constant 0.000000e+00 : f32
    %18 = vector.broadcast %cst_7 : f32 to vector<8x16xf32>
    %cst_8 = arith.constant -1.000000e+30 : f32
    %19 = vector.broadcast %cst_8 : f32 to vector<8x1xf32>
    %cst_9 = arith.constant 0.000000e+00 : f32
    %20 = vector.broadcast %cst_9 : f32 to vector<8x1xf32>
    %cst_10 = arith.constant 0.000000e+00 : f32
    %21 = vector.broadcast %cst_10 : f32 to vector<8x16xf32>
    %cst_11 = arith.constant -1.000000e+30 : f32
    %22 = vector.broadcast %cst_11 : f32 to vector<8x1xf32>
    %cst_12 = arith.constant 0.000000e+00 : f32
    %23 = vector.broadcast %cst_12 : f32 to vector<8x1xf32>
    %cst_13 = arith.constant 0.000000e+00 : f32
    %24 = vector.broadcast %cst_13 : f32 to vector<8x16xf32>
    %cst_14 = arith.constant -1.000000e+30 : f32
    %25 = vector.broadcast %cst_14 : f32 to vector<8x1xf32>
    %cst_15 = arith.constant 0.000000e+00 : f32
    %26 = vector.broadcast %cst_15 : f32 to vector<8x1xf32>
    %cst_16 = arith.constant 0.000000e+00 : f32
    %27 = vector.broadcast %cst_16 : f32 to vector<8x16xf32>
    %c1_i32 = arith.constant 1 : i32
    %28 = arith.addi %arg1, %c1_i32 : i32
    %cst_17 = arith.constant -1.000000e+30 : f32
    %c0_i32_18 = arith.constant 0 : i32
    %29 = arith.subi %28, %c0_i32_18 : i32
    %30 = arith.addi %c0_i32_18, %29 : i32
    %c1_i32_19 = arith.constant 1 : i32
    %31:12 = scf.for %arg7 = %c0_i32_18 to %30 step %c1_i32_19 iter_args(%arg8 = %16, %arg9 = %17, %arg10 = %18, %arg11 = %19, %arg12 = %20, %arg13 = %21, %arg14 = %22, %arg15 = %23, %arg16 = %24, %arg17 = %25, %arg18 = %26, %arg19 = %27) -> (vector<8x1xf32>, vector<8x1xf32>, vector<8x16xf32>, vector<8x1xf32>, vector<8x1xf32>, vector<8x16xf32>, vector<8x1xf32>, vector<8x1xf32>, vector<8x16xf32>, vector<8x1xf32>, vector<8x1xf32>, vector<8x16xf32>)  : i32 {
      %c8_i32_24 = arith.constant 8 : i32
      %48 = arith.muli %arg7, %c8_i32_24 : i32
      %49 = tpu.assume_multiple %48, 8 : i32
      %50 = arith.index_cast %49 : i32 to index
      %c0_25 = arith.constant 0 : index
      %51 = vector.load %arg6[%50, %c0_25] : memref<8x128xbf16, #tpu.memory_space<vmem>>, vector<8x128xbf16>
      %c8_i32_26 = arith.constant 8 : i32
      %52 = arith.muli %arg7, %c8_i32_26 : i32
      %53 = vector.broadcast %52 : i32 to vector<8x8xi32>
      %54 = arith.addi %15, %53 : vector<8x8xi32>
      %55 = arith.cmpi sle, %54, %14 : vector<8x8xi32>
      %56 = vector.extract_strided_slice %51 {offsets = [0, 0], sizes = [8, 16], strides = [1, 1]} : vector<8x128xbf16> to vector<8x16xbf16>
      %57 = vector.extract_strided_slice %51 {offsets = [0, 64], sizes = [8, 16], strides = [1, 1]} : vector<8x128xbf16> to vector<8x16xbf16>
      %58 = vector.extract_strided_slice %10 {offsets = [0, 0], sizes = [8, 16], strides = [1, 1]} : vector<8x64xbf16> to vector<8x16xbf16>
      %cst_27 = arith.constant dense<0.000000e+00> : vector<8x8xf32>
      %59 = tpu.matmul %58, %56, %cst_27 {dimension_numbers = #tpu.dot_dimension_numbers<[1], [1], [0], [0], [0, 0, 1, 0], [], []>} : vector<8x16xbf16>, vector<8x16xbf16>, vector<8x8xf32> -> vector<8x8xf32>
      %60 = vector.broadcast %cst_17 : f32 to vector<8x8xf32>
      %61 = arith.select %55, %59, %60 : vector<8x8xi1>, vector<8x8xf32>
      %cst_28 = arith.constant dense<0xFF800000> : vector<8xf32>
      %62 = vector.multi_reduction <maximumf>, %61, %cst_28 [1] : vector<8x8xf32> to vector<8xf32>
      %63 = vector.shape_cast %62 : vector<8xf32> to vector<8x1xf32>
      %64 = arith.maximumf %arg8, %63 : vector<8x1xf32>
      %65 = arith.subf %arg8, %64 : vector<8x1xf32>
      %66 = math.exp %65 : vector<8x1xf32>
      %67 = vector.broadcast %64 : vector<8x1xf32> to vector<8x8xf32>
      %68 = arith.subf %61, %67 : vector<8x8xf32>
      %69 = math.exp %68 : vector<8x8xf32>
      %70 = arith.mulf %66, %arg9 : vector<8x1xf32>
      %cst_29 = arith.constant dense<0.000000e+00> : vector<8xf32>
      %71 = vector.multi_reduction <add>, %69, %cst_29 [1] : vector<8x8xf32> to vector<8xf32>
      %72 = vector.shape_cast %71 : vector<8xf32> to vector<8x1xf32>
      %73 = arith.addf %70, %72 : vector<8x1xf32>
      %74 = arith.truncf %69 : vector<8x8xf32> to vector<8x8xbf16>
      %cst_30 = arith.constant dense<0.000000e+00> : vector<8x16xf32>
      %75 = tpu.matmul %74, %57, %cst_30 {dimension_numbers = #tpu.dot_dimension_numbers<[1], [0], [0], [1], [0, 0, 1, 1], [], []>} : vector<8x8xbf16>, vector<8x16xbf16>, vector<8x16xf32> -> vector<8x16xf32>
      %76 = vector.broadcast %66 : vector<8x1xf32> to vector<8x16xf32>
      %77 = arith.mulf %76, %arg10 : vector<8x16xf32>
      %78 = arith.addf %77, %75 : vector<8x16xf32>
      %79 = vector.extract_strided_slice %51 {offsets = [0, 16], sizes = [8, 16], strides = [1, 1]} : vector<8x128xbf16> to vector<8x16xbf16>
      %80 = vector.extract_strided_slice %51 {offsets = [0, 80], sizes = [8, 16], strides = [1, 1]} : vector<8x128xbf16> to vector<8x16xbf16>
      %81 = vector.extract_strided_slice %10 {offsets = [0, 16], sizes = [8, 16], strides = [1, 1]} : vector<8x64xbf16> to vector<8x16xbf16>
      %cst_31 = arith.constant dense<0.000000e+00> : vector<8x8xf32>
      %82 = tpu.matmul %81, %79, %cst_31 {dimension_numbers = #tpu.dot_dimension_numbers<[1], [1], [0], [0], [0, 0, 1, 0], [], []>} : vector<8x16xbf16>, vector<8x16xbf16>, vector<8x8xf32> -> vector<8x8xf32>
      %83 = vector.broadcast %cst_17 : f32 to vector<8x8xf32>
      %84 = arith.select %55, %82, %83 : vector<8x8xi1>, vector<8x8xf32>
      %cst_32 = arith.constant dense<0xFF800000> : vector<8xf32>
      %85 = vector.multi_reduction <maximumf>, %84, %cst_32 [1] : vector<8x8xf32> to vector<8xf32>
      %86 = vector.shape_cast %85 : vector<8xf32> to vector<8x1xf32>
      %87 = arith.maximumf %arg11, %86 : vector<8x1xf32>
      %88 = arith.subf %arg11, %87 : vector<8x1xf32>
      %89 = math.exp %88 : vector<8x1xf32>
      %90 = vector.broadcast %87 : vector<8x1xf32> to vector<8x8xf32>
      %91 = arith.subf %84, %90 : vector<8x8xf32>
      %92 = math.exp %91 : vector<8x8xf32>
      %93 = arith.mulf %89, %arg12 : vector<8x1xf32>
      %cst_33 = arith.constant dense<0.000000e+00> : vector<8xf32>
      %94 = vector.multi_reduction <add>, %92, %cst_33 [1] : vector<8x8xf32> to vector<8xf32>
      %95 = vector.shape_cast %94 : vector<8xf32> to vector<8x1xf32>
      %96 = arith.addf %93, %95 : vector<8x1xf32>
      %97 = arith.truncf %92 : vector<8x8xf32> to vector<8x8xbf16>
      %cst_34 = arith.constant dense<0.000000e+00> : vector<8x16xf32>
      %98 = tpu.matmul %97, %80, %cst_34 {dimension_numbers = #tpu.dot_dimension_numbers<[1], [0], [0], [1], [0, 0, 1, 1], [], []>} : vector<8x8xbf16>, vector<8x16xbf16>, vector<8x16xf32> -> vector<8x16xf32>
      %99 = vector.broadcast %89 : vector<8x1xf32> to vector<8x16xf32>
      %100 = arith.mulf %99, %arg13 : vector<8x16xf32>
      %101 = arith.addf %100, %98 : vector<8x16xf32>
      %102 = vector.extract_strided_slice %51 {offsets = [0, 32], sizes = [8, 16], strides = [1, 1]} : vector<8x128xbf16> to vector<8x16xbf16>
      %103 = vector.extract_strided_slice %51 {offsets = [0, 96], sizes = [8, 16], strides = [1, 1]} : vector<8x128xbf16> to vector<8x16xbf16>
      %104 = vector.extract_strided_slice %10 {offsets = [0, 32], sizes = [8, 16], strides = [1, 1]} : vector<8x64xbf16> to vector<8x16xbf16>
      %cst_35 = arith.constant dense<0.000000e+00> : vector<8x8xf32>
      %105 = tpu.matmul %104, %102, %cst_35 {dimension_numbers = #tpu.dot_dimension_numbers<[1], [1], [0], [0], [0, 0, 1, 0], [], []>} : vector<8x16xbf16>, vector<8x16xbf16>, vector<8x8xf32> -> vector<8x8xf32>
      %106 = vector.broadcast %cst_17 : f32 to vector<8x8xf32>
      %107 = arith.select %55, %105, %106 : vector<8x8xi1>, vector<8x8xf32>
      %cst_36 = arith.constant dense<0xFF800000> : vector<8xf32>
      %108 = vector.multi_reduction <maximumf>, %107, %cst_36 [1] : vector<8x8xf32> to vector<8xf32>
      %109 = vector.shape_cast %108 : vector<8xf32> to vector<8x1xf32>
      %110 = arith.maximumf %arg14, %109 : vector<8x1xf32>
      %111 = arith.subf %arg14, %110 : vector<8x1xf32>
      %112 = math.exp %111 : vector<8x1xf32>
      %113 = vector.broadcast %110 : vector<8x1xf32> to vector<8x8xf32>
      %114 = arith.subf %107, %113 : vector<8x8xf32>
      %115 = math.exp %114 : vector<8x8xf32>
      %116 = arith.mulf %112, %arg15 : vector<8x1xf32>
      %cst_37 = arith.constant dense<0.000000e+00> : vector<8xf32>
      %117 = vector.multi_reduction <add>, %115, %cst_37 [1] : vector<8x8xf32> to vector<8xf32>
      %118 = vector.shape_cast %117 : vector<8xf32> to vector<8x1xf32>
      %119 = arith.addf %116, %118 : vector<8x1xf32>
      %120 = arith.truncf %115 : vector<8x8xf32> to vector<8x8xbf16>
      %cst_38 = arith.constant dense<0.000000e+00> : vector<8x16xf32>
      %121 = tpu.matmul %120, %103, %cst_38 {dimension_numbers = #tpu.dot_dimension_numbers<[1], [0], [0], [1], [0, 0, 1, 1], [], []>} : vector<8x8xbf16>, vector<8x16xbf16>, vector<8x16xf32> -> vector<8x16xf32>
      %122 = vector.broadcast %112 : vector<8x1xf32> to vector<8x16xf32>
      %123 = arith.mulf %122, %arg16 : vector<8x16xf32>
      %124 = arith.addf %123, %121 : vector<8x16xf32>
      %125 = vector.extract_strided_slice %51 {offsets = [0, 48], sizes = [8, 16], strides = [1, 1]} : vector<8x128xbf16> to vector<8x16xbf16>
      %126 = vector.extract_strided_slice %51 {offsets = [0, 112], sizes = [8, 16], strides = [1, 1]} : vector<8x128xbf16> to vector<8x16xbf16>
      %127 = vector.extract_strided_slice %10 {offsets = [0, 48], sizes = [8, 16], strides = [1, 1]} : vector<8x64xbf16> to vector<8x16xbf16>
      %cst_39 = arith.constant dense<0.000000e+00> : vector<8x8xf32>
      %128 = tpu.matmul %127, %125, %cst_39 {dimension_numbers = #tpu.dot_dimension_numbers<[1], [1], [0], [0], [0, 0, 1, 0], [], []>} : vector<8x16xbf16>, vector<8x16xbf16>, vector<8x8xf32> -> vector<8x8xf32>
      %129 = vector.broadcast %cst_17 : f32 to vector<8x8xf32>
      %130 = arith.select %55, %128, %129 : vector<8x8xi1>, vector<8x8xf32>
      %cst_40 = arith.constant dense<0xFF800000> : vector<8xf32>
      %131 = vector.multi_reduction <maximumf>, %130, %cst_40 [1] : vector<8x8xf32> to vector<8xf32>
      %132 = vector.shape_cast %131 : vector<8xf32> to vector<8x1xf32>
      %133 = arith.maximumf %arg17, %132 : vector<8x1xf32>
      %134 = arith.subf %arg17, %133 : vector<8x1xf32>
      %135 = math.exp %134 : vector<8x1xf32>
      %136 = vector.broadcast %133 : vector<8x1xf32> to vector<8x8xf32>
      %137 = arith.subf %130, %136 : vector<8x8xf32>
      %138 = math.exp %137 : vector<8x8xf32>
      %139 = arith.mulf %135, %arg18 : vector<8x1xf32>
      %cst_41 = arith.constant dense<0.000000e+00> : vector<8xf32>
      %140 = vector.multi_reduction <add>, %138, %cst_41 [1] : vector<8x8xf32> to vector<8xf32>
      %141 = vector.shape_cast %140 : vector<8xf32> to vector<8x1xf32>
      %142 = arith.addf %139, %141 : vector<8x1xf32>
      %143 = arith.truncf %138 : vector<8x8xf32> to vector<8x8xbf16>
      %cst_42 = arith.constant dense<0.000000e+00> : vector<8x16xf32>
      %144 = tpu.matmul %143, %126, %cst_42 {dimension_numbers = #tpu.dot_dimension_numbers<[1], [0], [0], [1], [0, 0, 1, 1], [], []>} : vector<8x8xbf16>, vector<8x16xbf16>, vector<8x16xf32> -> vector<8x16xf32>
      %145 = vector.broadcast %135 : vector<8x1xf32> to vector<8x16xf32>
      %146 = arith.mulf %145, %arg19 : vector<8x16xf32>
      %147 = arith.addf %146, %144 : vector<8x16xf32>
      scf.yield %64, %73, %78, %87, %96, %101, %110, %119, %124, %133, %142, %147 : vector<8x1xf32>, vector<8x1xf32>, vector<8x16xf32>, vector<8x1xf32>, vector<8x1xf32>, vector<8x16xf32>, vector<8x1xf32>, vector<8x1xf32>, vector<8x16xf32>, vector<8x1xf32>, vector<8x1xf32>, vector<8x16xf32>
    }
    %cst_20 = arith.constant 0.000000e+00 : f32
    %32 = vector.broadcast %cst_20 : f32 to vector<8x16xf32>
    %33 = vector.broadcast %31#1 : vector<8x1xf32> to vector<8x16xf32>
    %34 = arith.divf %31#2, %33 : vector<8x16xf32>
    %35 = arith.addf %32, %34 : vector<8x16xf32>
    %36 = vector.broadcast %31#4 : vector<8x1xf32> to vector<8x16xf32>
    %37 = arith.divf %31#5, %36 : vector<8x16xf32>
    %38 = arith.addf %35, %37 : vector<8x16xf32>
    %39 = vector.broadcast %31#7 : vector<8x1xf32> to vector<8x16xf32>
    %40 = arith.divf %31#8, %39 : vector<8x16xf32>
    %41 = arith.addf %38, %40 : vector<8x16xf32>
    %42 = vector.broadcast %31#10 : vector<8x1xf32> to vector<8x16xf32>
    %43 = arith.divf %31#11, %42 : vector<8x16xf32>
    %44 = arith.addf %41, %43 : vector<8x16xf32>
    %c0_21 = arith.constant 0 : index
    %c0_22 = arith.constant 0 : index
    %c0_23 = arith.constant 0 : index
    %45 = vector.load %arg5[%c0_21, %c0_22, %c0_23] : memref<1x8x16xf32, #tpu.memory_space<vmem>>, vector<1x8x16xf32>
    %46 = vector.shape_cast %45 : vector<1x8x16xf32> to vector<8x16xf32>
    %47 = vector.shape_cast %44 : vector<8x16xf32> to vector<1x8x16xf32>
    tpu.vector_store %arg5[%c0_21, %c0_22, %c0_23], %47 {strides = array<i32>} : memref<1x8x16xf32, #tpu.memory_space<vmem>>, vector<1x8x16xf32>,
    return
  }
  func.func @transform_0(%arg0: i32, %arg1: i32) -> (i32, i32, i32) {
    %c0_i32 = arith.constant 0 : i32
    %c0_i32_0 = arith.constant 0 : i32
    %c0_i32_1 = arith.constant 0 : i32
    return %arg0, %c0_i32, %c0_i32_0 : i32, i32, i32
  }
  func.func @transform_1(%arg0: i32, %arg1: i32) -> (i32, i32) {
    %c0_i32 = arith.constant 0 : i32
    %c0_i32_0 = arith.constant 0 : i32
    %c0_i32_1 = arith.constant 0 : i32
    return %c0_i32, %c0_i32_0 : i32, i32
  }
  func.func @transform_2(%arg0: i32, %arg1: i32) -> (i32, i32) {
    %c0_i32 = arith.constant 0 : i32
    %c0_i32_0 = arith.constant 0 : i32
    %c0_i32_1 = arith.constant 0 : i32
    return %c0_i32, %c0_i32_0 : i32, i32
  }
  func.func @transform_3(%arg0: i32, %arg1: i32) -> (i32, i32, i32) {
    %c0_i32 = arith.constant 0 : i32
    %c0_i32_0 = arith.constant 0 : i32
    return %arg0, %arg1, %c0_i32 : i32, i32, i32
  }
}

</mosaic_0001>

<bundles_post_ra>
// kernel: tpu_custom_call.1
= control target key start
LH: loop header
LB: loop body
LE: loop exit
PB: predicated region body
PF: predicated region fallthrough
CT: control target
= control target key end

     0   :  { %8 = vsyncpa [#allocation4], 0  ;;  %s1808_s0 = inlined_call_operand.hbm [shape: f32[2,8,32], index: 0, kind: input, shape index: {}]   ;;  %s1809_s1 = inlined_call_operand.hbm [shape: f32[32,64], index: 1, kind: input, shape index: {}]   ;;  %s1810_s2 = inlined_call_operand.hbm [shape: f32[32,128], index: 2, kind: input, shape index: {}]   ;;  %s1811_s3 = inlined_call_operand.hbm [shape: f32[2,8,16], index: 3, kind: output, shape index: {}]  }
   0x1   :  { %10 = vsyncpa [#allocation4 + $0x1], 0 }
   0x2   :  { %11 = vsyncpa [#allocation7], 0 }
   0x3   :  { %12 = vsyncpa [#allocation5], 0 }
   0x4   :  { %14 = vsyncpa [#allocation5 + $0x1], 0  ;;  %s1382_s12 = smov 0   ;;  %s1384_s13 = smov 0  }
   0x5   :  { %s1386_s14 = smov 0   ;;  %s1388_s15 = smov 0  }
   0x6   :  { %s1390_s16 = smov 0   ;;  %s1392_s17 = smov 0  }
   0x7 LB: > { %s820_s18 = sadd.s32 4294967295, %s1297_s17   ;;  %p822_p0 = scmp.ge.s32.totalorder %s1297_s17, 1  ;;  %s1297_s17 = sphi %s1392_s17, %s20_s17   ;;  %s1293_s16 = sphi %s1390_s16, %s1850_s16   ;;  %s1289_s15 = sphi %s1388_s15, %s1849_s15   ;;  %s1285_s14 = sphi %s1386_s14, %s1848_s14   ;;  %s1281_s13 = sphi %s1384_s13, %s1847_s13   ;;  %s1277_s12 = sphi %s1382_s12, %s1846_s12  }
   0x8   : > { %p1416_p1 = scmp.eq.s32.totalorder %s820_s18, 0  ;;  %p133_p2 = scmp.lt.s32.totalorder %s1297_s17, 3 }
   0x9   : > { %s144_s22 = sshll.u32 %s1809_s1, 4  ;;  %s1351_s24 = smov [#allocation6]   ;;  %s145_s22 = int_to_ptr.hbm [resolvable:$true] %s144_s22 }
   0xa   : > { %p1424_p3 = pnand %p822_p0, %p133_p2  ;;  %s146_s25 = sshll.u32 %s1351_s24, 4  ;;  %s147_s25 = int_to_ptr.vmem [resolvable:$true] %s146_s25 }
   0xb   : > { %p825_p6 = scmp.ge.s32.totalorder %s1297_s17, 2  ;;  %s158_s28 = sshll.u32 %s1810_s2, 4  ;;  %s159_s28 = int_to_ptr.hbm [resolvable:$true] %s158_s28 }
   0xc   : > { %p861_p4 = pneg %p1424_p3  ;;  %s1352_s29 = smov 128  }
   0xd   : > { %s1353_s30 = smov 8   ;;  %s1354_s4 = smov [#allocation8]  }
   0xe   : > { %p862_p5 = pnand %p861_p4, %p1416_p1  ;;  %s160_s5 = sshll.u32 %s1354_s4, 4  ;;  %s161_s5 = int_to_ptr.vmem [resolvable:$true] %s160_s5 }
   0xf   : > { %s32_s6 = sadd.s32 1, %s1293_s16  ;;  %s821_s7 = sadd.s32 4294967294, %s1297_s17  }
  0x10   : > { %864 = dma.hbm_to_vmem [thread:$0]  (!%p862_p5), %s145_s22, 512, %s147_s25, [#allocation7], %s1352_s29, %s1352_s29, %s1353_s30  }
  0x11   : > { %867 = dma.hbm_to_vmem [thread:$0]  (!%p862_p5), %s159_s28, 512, %s161_s5, [#allocation7], %s1352_s29, %s1352_s29, %s1353_s30  }
  0x12   : > { %p34_p7 = scmp.ge.s32.totalorder %s32_s6, 2  ;;  %s39_s8 = sadd.s32 1, %s1285_s14 }
  0x13   : > { %p46_p8 = scmp.ne.s32.totalorder %s1285_s14, %s1281_s13  ;;  %p47_p9 = scmp.eq.s32.totalorder %s1297_s17, 0 }
  0x14   : > { %s1852_s6 = smov (%p34_p7, %s32_s6), 0  ;;  %p52_p10 = scmp.ne.s32.totalorder %s1281_s13, %s1277_s12 }
  0x15   : > { %s36_s9 = ssub.s32 %s1293_s16, %s1852_s6  ;;  %p120_p11 = scmp.eq.s32.totalorder %s820_s18, 1 }
  0x16   : > { %p37_p12 = scmp.eq.s32.totalorder %s36_s9, 0  ;;  %p1452_p13 = por %p1416_p1, %p52_p10 }
  0x17   : > { %p1456_p0 = por %p120_p11, %p46_p8  ;;  %p126_p2 = scmp.eq.s32.totalorder %s821_s7, 1 }
  0x18   : > { %s1461_s20 = scalar_select %p37_p12, %s1285_s14, %s39_s8  }
  0x19   : > { %p48_p4 = por %p47_p9, %p46_p8  ;;  %p1463_p5 = por %p126_p2, %p52_p10 }
  0x1a   : > { %s174_s22 = sand.u32 1, %s1285_s14   ;;  %s827_s18 = sshll.u32 %s1293_s16, 3 }
  0x1b   : > { %p878_p7 = scmp.lt.s32.totalorder %s1297_s17, 2  ;;  %s826_s24 = sshll.u32 %s174_s22, 3 }
  0x1c   : > { %s182_s27 = scalar_lea.hbm %s1808_s0, %s827_s18  ;;  %s178_s29 = scalar_lea.vmem [#allocation3], %s826_s24 }
  0x1d   : > { %s184_s28 = sshll.u32 %s182_s27, 4  ;;  %s186_s30 = sshll.u32 %s178_s29, 4  ;;  %s185_s28 = int_to_ptr.hbm [resolvable:$true] %s184_s28  ;;  %s187_s30 = int_to_ptr.vmem [resolvable:$true] %s186_s30 }
  0x1e   : > { %p869_p11 = pnand %p878_p7, %p48_p4  ;;  %s175_s4 = scalar_lea.sflag [#allocation4], %s174_s22 }
  0x1f   : > { %195 = sbr.rel (%p1424_p3) target bundleno = 900 (0x384), region = 32  ;;  %s1476_s5 = sand.u32 (!%p1424_p3), 1, %s1281_s13  }
  0x20   : > { %871 = dma.hbm_to_vmem [thread:$0]  (!%p869_p11), %s185_s28, 128, %s187_s30, %s175_s4  }
  0x21   : > { %s829_s7 = sshll.u32 (!%p1424_p3), %s1476_s5, 3  ;;  %s198_s8 = scalar_lea.sflag (!%p1424_p3), [#allocation4], %s1476_s5 }
  0x22   : > { %s201_s9 = scalar_lea.vmem (!%p1424_p3), [#allocation3], %s829_s7 }
  0x24   : > { %1264 = dma.done.wait (%p1452_p13), %s198_s8, 128  }
  0x25   : > { %1266 = vsyncadd (%p1452_p13), %s198_s8, 4294967168 }
  0x26   : > { %1268 = dma.done.wait (%p1416_p1), [#allocation7], 1024  }
  0x27   : > { %1270 = vsyncadd (%p1416_p1), [#allocation7], 4294966272  ;;  %v244_v0 = vld [vmem:[#allocation8 + $0x18] sm:$0xff]  ;;  %v243_v1 = vld [vmem:[#allocation8 + $0x10] sm:$0xff]  ;;  %vm245_vm0 = vcmask 261120   ;;  %v303_v9 = vlaneseq  ;;  %s1498_s19 = scalar_lea.vmem [#allocation9], %s829_s7 }
  0x28   : > { %v277_v2 = vld [vmem:[#allocation6 + $0x18] sm:$0xff]  ;;  %261 = vmatpush.msra.mxu0 %v244_v0  ;;  %v276_v3 = vld [vmem:[#allocation6 + $0x10] sm:$0xff]  ;;  %v242_v4 = vld [vmem:[#allocation8 + $0x8] sm:$0xff]  ;;  %v1500_v16 = vmov 0.0   ;;  %v1502_v17 = vmov 0.0   ;;  %v1506_v19 = vmov 0.0  }
  0x29   : > { %294 = vmatpush.msra.mxu1 %v277_v2  ;;  %v275_v5 = vld [vmem:[#allocation6 + $0x8] sm:$0xff]  ;;  %v241_v6 = vld [vmem:[#allocation8] sm:$0xff]  ;;  %v240_v8 = vld [vmem:[%s201_s9] sm:$0xff]  ;;  %v1490_v10 = vshrl.u32 %v303_v9, 7  ;;  %v1492_v11 = vand.u32 127, %v303_v9  ;;  %v1508_v20 = vmov 0.0  }
  0x2a   : > { %262 = vmatpush.msra.mxu0 %v243_v1  ;;  %v274_v7 = vld [vmem:[#allocation6] sm:$0xff]  ;;  %v1504_v18 = vmov -1e+30   ;;  %v1510_v21 = vmov -1e+30   ;;  %v1512_v22 = vmov 0.0  }
  0x2b   : > { %295 = vmatpush.msra.mxu1 %v276_v3  ;;  %v1514_v23 = vmov 0.0   ;;  %v1516_v24 = vmov -1e+30   ;;  %v1518_v25 = vmov 0.0   ;;  %v1520_v26 = vmov 0.0   ;;  %s1524_s23 = smov 0  }
  0x2c   : > { %263 = vmatpush.msra.mxu0 %v242_v4  ;;  %v1522_v27 = vmov -1e+30  }
  0x2d   : > { %296 = vmatpush.msra.mxu1 %v275_v5 }
  0x2e   : > { %264 = vmatpush.msra.mxu0 %v241_v6 }
  0x2f   : > { %297 = vmatpush.msra.mxu1 %v274_v7  ;;  %833 = vmatmul.msk.f32.vlgmr.msra.gmra.mxu0 %vm245_vm0, %v240_v8 }
  0x30   : > { %834 = vmatmul.msk.f32.vlgmr.msra.gmra.mxu1 %vm245_vm0, %v240_v8 }
  0xac   : > { %v266_v12 = vpop.f32.mrf.mxu0 }
  0xad   : > { %v299_v13 = vpop.f32.mrf.mxu1  ;;  %v269_v14 = vpack.c.bf16 %v266_v12, %v266_v12 }
  0xae   : > { %v1494_v15 = vpack.c.bf16 %v299_v13, %v299_v13 }
  0xaf   : > { %270 = vst [vmem:[#allocation2] sm:$0xf] %v269_v14 }
  0xb0 LB: >> { %s835_s10 = sshll.u32 %s1349_s23, 3  ;;  %vm337_vm1 = vcmask 130048   ;;  %v403_v32 = vunpack.c.l.b16 %v1494_v15  ;;  %s1355_s25 = smov 96   ;;  %vm358_vm3 = vcmask 64512   ;;  %vm383_vm4 = vcmask 1043456   ;;  %s1349_s23 = sphi %s1524_s23, %s313_s23   ;;  %v1345_v27 = vphi %v1522_v27, %v1837_v27   ;;  %v1341_v26 = vphi %v1520_v26, %v1836_v26   ;;  %v1337_v25 = vphi %v1518_v25, %v1835_v25   ;;  %v1333_v24 = vphi %v1516_v24, %v1834_v24   ;;  %v1329_v23 = vphi %v1514_v23, %v1833_v23   ;;  %v1325_v22 = vphi %v1512_v22, %v1832_v22   ;;  %v1321_v21 = vphi %v1510_v21, %v1831_v21   ;;  %v1317_v20 = vphi %v1508_v20, %v1830_v20   ;;  %v1313_v19 = vphi %v1506_v19, %v1829_v19   ;;  %v1309_v18 = vphi %v1504_v18, %v1828_v18   ;;  %v1305_v17 = vphi %v1502_v17, %v1827_v17   ;;  %v1301_v16 = vphi %v1500_v16, %v1826_v16  }
  0xb1   : >> { %s329_s22 = sshra.s32 %s835_s10, 3  ;;  %s1356_s26 = smov 112   ;;  %v334_v38 = vstv %s835_s10 }
  0xb2   : >> { %s836_s18 = sshll.u32 %s329_s22, 2  ;;  %v404_v33 = vpack.c.b16 %v403_v32, %v403_v32  ;;  %s1357_s27 = smov 80   ;;  %v335_v39 = vadd.s32 %v334_v38, %v1492_v11 }
  0xb3   : >> { %s332_s24 = scalar_lea.vmem [#allocation2], %s836_s18  ;;  %s1358_s28 = smov 64  }
  0xb4   : >> { %405 = vrot.lane.b32.xlu1 %v404_v33, %s1356_s26  ;;  %s1359_s29 = smov 48   ;;  %vm336_vm2 = vcmp.le.s32.totalorder %v335_v39, %v1490_v10  ;;  %s1360_s30 = smov 16  }
  0xb5   : >> { %s1361_s4 = smov 32   ;;  %s313_s23 = sadd.s32 1, %s1349_s23  }
  0xb6   : >> { %v333_v28 = vld [vmem:[%s332_s24] sm:$0xf]  ;;  %p1667_p1 = scmp.ge.s32.totalorder %s313_s23, 1 }
  0xb7   : >> { %v342_v29 = vsel %vm337_vm1, %v333_v28, 0  ;;  %v376_v30 = vunpack.c.l.b16 %v333_v28  ;;  %s846_s8 = sshll.u32 (%p1667_p1), %s1289_s15, 3  ;;  %s674_s10 = sshll.u32 (%p1667_p1), %s1498_s19, 4  ;;  %s675_s10 = int_to_ptr.vmem [resolvable:$true] %s674_s10 }
  0xb8   : >> { %351 = vmatpush.bf16.xpose.msra.mxu0 %v342_v29  ;;  %s672_s23 = scalar_lea.hbm (%p1667_p1), %s1811_s3, %s846_s8  ;;  %s661_s18 = scalar_lea.sflag (%p1667_p1), [#allocation5], %s1476_s5 }
  0xb9   : >> { %v1569_v31 = vpack.c.b16 %v376_v30, %v376_v30  ;;  %s676_s22 = sshll.u32 (%p1667_p1), %s672_s23, 4  ;;  %s677_s22 = int_to_ptr.hbm [resolvable:$true] %s676_s22 }
  0xba   : > { %s1173_s24 = sshra.s32 (%p1667_p1), %s677_s22, 4  ;;  %s1174_s24 = int_to_ptr.hbm [resolvable:$true] %s1173_s24 }
  0xbb   : >> { %470 = vrot.lane.b32.xlu2 %v1569_v31, %s1355_s25  ;;  %p1180_p10 = scmp.lt.s32.totalorder (%p1667_p1), %s1174_s24, %s1811_s3 }
  0xbc   : >> { %378 = vrot.lane.b32.xlu1 %v1569_v31, %s1358_s28  ;;  %s1179_s28 = scalar_lea.hbm (%p1667_p1), %s1811_s3, 16 }
  0xbf   : >> { %837 = vmatmul.msk.bf16.vlgmr.msra.gmra.mxu0 %vm337_vm1, %v1494_v15 }
  0xc3   : >> { %533 = vrot.lane.b32.xlu2 %v1569_v31, %s1357_s27 }
  0xc4   : >> { %468 = vrot.lane.b32.xlu1 %v404_v33, %s1355_s25  ;;  %s1175_s25 = scalar_lea.hbm (%p1667_p1), %s1174_s24, 8 }
  0xc5   : > { %p1176_p3 = scmp.ne.s32.totalorder (%p1667_p1), %s1174_s24, %s1175_s25  ;;  %p1181_p12 = scmp.lt.s32.totalorder (%p1667_p1), %s1179_s28, %s1175_s25 }
  0xc7   : > { %p1177_p8 = pnand (%p1667_p1), %p1176_p3, %p1456_p0  ;;  %p1182_p13 = por (%p1667_p1), %p1181_p12, %p1180_p10 }
  0xc9   : > { %p1178_p9 = pneg (%p1667_p1), %p1177_p8 }
  0xcb   : >> { %531 = vrot.lane.b32.xlu2 %v404_v33, %s1357_s27  ;;  %p1183_p2 = pnand (%p1667_p1), %p1182_p13, %p1178_p9 }
  0xd3   : >> { %445 = vrot.lane.b32.xlu2 %v1569_v31, %s1359_s29 }
 0x115   : >> { %v471_v34 = vpop.permute.xlu2 %470 }
 0x116   : >> { %v476_v50 = vsel %vm337_vm1, %v471_v34, 0 }
 0x11d   : >> { %v534_v35 = vpop.permute.xlu2 %533 }
 0x11e   : >> { %v539_v36 = vsel %vm337_vm1, %v534_v35, 0 }
 0x11f   : >> { %548 = vmatpush.bf16.xpose.msrb.mxu0 %v539_v36 }
 0x125   : >> { %v532_v37 = vpop.permute.xlu2 %531 }
 0x126   : >> { %843 = vmatmul.msk.bf16.vlgmr.msrb.gmra.mxu0 %vm337_vm1, %v532_v37  ;;  %v406_v44 = vpop.permute.xlu1 %405 }
 0x12d   : >> { %v446_v63 = vpop.permute.xlu2 %445 }
 0x12e   : >> { %v379_v45 = vpop.permute.xlu1 %378 }
 0x12f   : >> { %v385_v46 = vsel %vm383_vm4, %v379_v45, 0 }
 0x130   : >> { %394 = vmatpush.bf16.msra.mxu1 %v385_v46 }
 0x134   : >> { %485 = vmatpush.bf16.xpose.msrb.mxu1 %v476_v50 }
 0x136   : >> { %v469_v62 = vpop.permute.xlu1 %468 }
 0x13c   : >> { %v353_v40 = vpop.f32.mrf.mxu0 }
 0x13d   : >> { %v357_v41 = vsel %vm336_vm2, %v353_v40, -1e+30 }
 0x13e   : >> { %v359_v42 = vsel %vm358_vm3, %v357_v41, -inf }
 0x13f   : >> { %360 = vmax.xlane.f32.xlu0 %v359_v42 }
 0x144   : >> { %v355_v43 = vpop.f32.mrf.mxu0 }
 0x153   : >> { %407 = vrot.lane.b32.xlu0 %v1569_v31, %s1356_s26 }
 0x1a3   : >> { %v550_v47 = vpop.f32.mrf.mxu0 }
 0x1a4   : >> { %v554_v48 = vsel %vm336_vm2, %v550_v47, -1e+30 }
 0x1a5   : >> { %v555_v49 = vsel %vm358_vm3, %v554_v48, -inf }
 0x1a6   : >> { %556 = vmax.xlane.f32.xlu2 %v555_v49 }
 0x1ab   : >> { %v552_v51 = vpop.f32.mrf.mxu0 }
 0x1b2   : >> { %v361_v52 = vpop.xlane.xlu0 %360 }
 0x1b3   : >> { %v1594_v53 = vmax.f32 %v1345_v27, %v361_v52  }
 0x1b5   : >> { %v363_v54 = vsub.f32 %v1345_v27, %v1594_v53  ;;  %v366_v55 = vsub.f32 %v357_v41, %v1594_v53 }
 0x1b7   : >> { %v367_v56 = vmul.f32 1.442695, %v366_v55  ;;  %v364_v3 = vmul.f32 1.442695, %v363_v54 }
 0x1b9   : >> { %1045 = vpow2.f32 %v367_v56 }
 0x1ba   : >> { %1047 = vpow2.f32 %v364_v3 }
 0x1bf   : >> { %v1046_v57 = vpop.eup %1045 }
 0x1c0   : >> { %v370_v58 = vsel %vm358_vm3, %v1046_v57, 0.0  ;;  %v374_v59 = vpack.c.bf16 %v1046_v57, %v1046_v57  ;;  %v1048_v4 = vpop.eup %1047 }
 0x1c1   : >> { %371 = vadd.xlane.f32.xlu2 %v370_v58  ;;  %v369_v5 = vmul.f32 %v1341_v26, %v1048_v4  ;;  %v400_v8 = vmul.f32 %v1337_v25, %v1048_v4 }
 0x1c2   : >> { %838 = vmatmul.msk.bf16.vlgmr.msra.gmra.mxu1 %vm358_vm3, %v374_v59 }
 0x1c5   : >> { %v408_v60 = vpop.permute.xlu0 %407 }
 0x1c6   : >> { %v413_v61 = vsel %vm337_vm1, %v408_v60, 0 }
 0x1c7   : >> { %422 = vmatpush.bf16.xpose.msra.mxu2 %v413_v61 }
 0x1ce   : >> { %839 = vmatmul.msk.bf16.vlgmr.msra.gmra.mxu2 %vm337_vm1, %v406_v44 }
 0x1d2   : >> { %841 = vmatmul.msk.bf16.vlgmr.msrb.gmra.mxu1 %vm337_vm1, %v469_v62 }
 0x219   : >> { %v557_v0 = vpop.xlane.xlu2 %556 }
 0x21a   : >> { %v1605_v1 = vmax.f32 %v1309_v18, %v557_v0  }
 0x21c   : >> { %v559_v2 = vsub.f32 %v1309_v18, %v1605_v1  ;;  %v562_v34 = vsub.f32 %v554_v48, %v1605_v1 }
 0x21e   : >> { %v563_v35 = vmul.f32 1.442695, %v562_v34  ;;  %v560_v57 = vmul.f32 1.442695, %v559_v2 }
 0x220   : >> { %1049 = vpow2.f32 %v563_v35 }
 0x226   : >> { %v1050_v36 = vpop.eup %1049 }
 0x227   : >> { %v566_v37 = vsel %vm358_vm3, %v1050_v36, 0.0  ;;  %v570_v51 = vpack.c.bf16 %v1050_v36, %v1050_v36 }
 0x234   : >> { %v372_v6 = vpop.xlane.xlu2 %371 }
 0x235   : >> { %v1610_v26 = vadd.f32 %v372_v6, %v369_v5  }
 0x237   : >> { %v1817_v7 = vmov %v1610_v26 }
 0x238   : > { %v605_v34 = vand.u32 (%p1667_p1), 2147483648, %v1817_v7  ;;  %vm599_vm5 = vweird.f32 (%p1667_p1), %v1817_v7 }
 0x23f   : >> { %v396_v9 = vpop.f32.mrf.mxu1 }
 0x240   : >> { %v1613_v25 = vadd.f32 %v400_v8, %v396_v9  }
 0x242   : >> { %v1818_v12 = vmov %v1613_v25  ;;  %v451_v25 = vsel %vm383_vm4, %v446_v63, 0 }
 0x243   : >> { %460 = vmatpush.bf16.msra.mxu3 %v451_v25  ;;  %v1835_v25 = vmov %v1818_v12 }
 0x247   : >> { %v398_v13 = vpop.f32.mrf.mxu1 }
 0x24f   : >> { %v487_v14 = vpop.f32.mrf.mxu1 }
 0x250   : >> { %v491_v27 = vsel %vm336_vm2, %v487_v14, -1e+30 }
 0x251   : >> { %v424_v28 = vpop.f32.mrf.mxu2  ;;  %v492_v30 = vsel %vm358_vm3, %v491_v27, -inf }
 0x252   : >> { %v428_v29 = vsel %vm336_vm2, %v424_v28, -1e+30  ;;  %493 = vmax.xlane.f32.xlu0 %v492_v30 }
 0x253   : >> { %v429_v32 = vsel %vm358_vm3, %v428_v29, -inf }
 0x254   : >> { %430 = vmax.xlane.f32.xlu1 %v429_v32 }
 0x257   : >> { %v489_v26 = vpop.f32.mrf.mxu1 }
 0x259   : >> { %v426_v33 = vpop.f32.mrf.mxu2 }
 0x266   : >> { %571 = vrot.lane.b32.xlu0 %v1569_v31, %s1360_s30 }
 0x26d   : >> { %508 = vrot.lane.b32.xlu1 %v1569_v31, %s1361_s4 }
 0x290   : >> { %567 = vadd.xlane.f32.xlu0 %v566_v37 }
 0x2c5   : >> { %v494_v38 = vpop.xlane.xlu0 %493 }
 0x2c6   : >> { %v1627_v39 = vmax.f32 %v1321_v21, %v494_v38  }
 0x2c7   : >> { %v431_v40 = vpop.xlane.xlu1 %430 }
 0x2c8   : >> { %v1630_v41 = vmax.f32 %v1333_v24, %v431_v40   ;;  %v496_v31 = vsub.f32 %v1321_v21, %v1627_v39  ;;  %v499_v45 = vsub.f32 %v491_v27, %v1627_v39 }
 0x2ca   : >> { %v433_v42 = vsub.f32 %v1333_v24, %v1630_v41  ;;  %v436_v43 = vsub.f32 %v428_v29, %v1630_v41  ;;  %v500_v46 = vmul.f32 1.442695, %v499_v45  ;;  %v497_v63 = vmul.f32 1.442695, %v496_v31 }
 0x2cc   : >> { %v437_v44 = vmul.f32 1.442695, %v436_v43  ;;  %v434_v62 = vmul.f32 1.442695, %v433_v42 }
 0x2ce   : >> { %1051 = vpow2.f32 %v437_v44 }
 0x2cf   : >> { %1053 = vpow2.f32 %v500_v46 }
 0x2d0   : >> { %1055 = vpow2.f32 %v560_v57 }
 0x2d1   : >> { %1057 = vpow2.f32 %v434_v62 }
 0x2d2   : >> { %1059 = vpow2.f32 %v497_v63 }
 0x2d3   : > { %1061 = vrcp.f32 (%p1667_p1), %v1817_v7 }
 0x2d4   : >> { %v1052_v47 = vpop.eup %1051 }
 0x2d5   : >> { %v440_v48 = vsel %vm358_vm3, %v1052_v47, 0.0  ;;  %v444_v49 = vpack.c.bf16 %v1052_v47, %v1052_v47  ;;  %v1054_v24 = vpop.eup %1053 }
 0x2d6   : >> { %441 = vadd.xlane.f32.xlu2 %v440_v48  ;;  %v503_v52 = vsel %vm358_vm3, %v1054_v24, 0.0  ;;  %v507_v56 = vpack.c.bf16 %v1054_v24, %v1054_v24  ;;  %v1056_v58 = vpop.eup %1055  ;;  %v1834_v24 = vmov %v1630_v41 }
 0x2d7   : >> { %840 = vmatmul.msk.bf16.vlgmr.msra.gmra.mxu3 %vm358_vm3, %v444_v49  ;;  %v565_v59 = vmul.f32 %v1305_v17, %v1056_v58  ;;  %v1058_v0 = vpop.eup %1057 }
 0x2d8   : >> { %v572_v50 = vpop.permute.xlu0 %571  ;;  %v439_v3 = vmul.f32 %v1329_v23, %v1058_v0  ;;  %v1060_v6 = vpop.eup %1059  ;;  %v466_v9 = vmul.f32 %v1325_v22, %v1058_v0 }
 0x2d9   : >> { %v577_v21 = vsel %vm383_vm4, %v572_v50, 0  ;;  %v502_v18 = vmul.f32 %v1317_v20, %v1060_v6  ;;  %v1062_v36 = vpop.eup (%p1667_p1), %1061 }
 0x2da   : >> { %586 = vmatpush.bf16.msrb.mxu2 %v577_v21  ;;  %v1831_v21 = vmov %v1627_v39  ;;  %v595_v37 = vmul.f32 (%p1667_p1), %v1062_v36, %v1817_v7  ;;  %vm600_vm9 = vweird.f32 (%p1667_p1), %v1062_v36 }
 0x2db   : > { %vm1734_vm12 = vmor (%p1667_p1), %vm599_vm5, %vm600_vm9 }
 0x2dd   : >> { %844 = vmatmul.msk.bf16.vlgmr.msrb.gmra.mxu2 %vm358_vm3, %v570_v51 }
 0x2de   : >> { %504 = vadd.xlane.f32.xlu2 %v503_v52 }
 0x2df   : >> { %v509_v54 = vpop.permute.xlu1 %508 }
 0x2e0   : >> { %v514_v55 = vsel %vm383_vm4, %v509_v54, 0 }
 0x2e1   : >> { %523 = vmatpush.bf16.msrb.mxu3 %v514_v55 }
 0x2e7   : >> { %842 = vmatmul.msk.bf16.vlgmr.msrb.gmra.mxu3 %vm358_vm3, %v507_v56 }
 0x303   : >> { %v568_v60 = vpop.xlane.xlu0 %567 }
 0x304   : >> { %v1649_v17 = vadd.f32 %v568_v60, %v565_v59  }
 0x306   : >> { %v1819_v61 = vmov %v1649_v17  ;;  %v592_v17 = vmul.f32 %v1301_v16, %v1056_v58 }
 0x307   : > { %vm647_vm13 = vweird.f32 (%p1667_p1), %v1819_v61  ;;  %v651_v46 = vand.u32 (%p1667_p1), 2147483647, %v1819_v61  ;;  %v653_v47 = vand.u32 (%p1667_p1), 2147483648, %v1819_v61 }
 0x309   : > { %vm652_vm5 = vcmp.eq.f32.partialorder (%p1667_p1), %v651_v46, 8.507059e+37  ;;  %v654_v58 = vor.u32 (%p1667_p1), 1.1754944e-38, %v653_v47 }
 0x349   : >> { %v442_v4 = vpop.xlane.xlu2 %441 }
 0x34a   : >> { %v1652_v23 = vadd.f32 %v442_v4, %v439_v3  }
 0x34c   : >> { %v1820_v5 = vmov %v1652_v23  ;;  %v529_v23 = vmul.f32 %v1313_v19, %v1060_v6 }
 0x34d   : > { %1063 = vrcp.f32 (%p1667_p1), %v1820_v5  ;;  %v621_v35 = vand.u32 (%p1667_p1), 2147483648, %v1820_v5  ;;  %vm615_vm6 = vweird.f32 (%p1667_p1), %v1820_v5  ;;  %v619_v10 = vand.u32 (%p1667_p1), 2147483647, %v1820_v5 }
 0x34f   : > { %vm620_vm0 = vcmp.eq.f32.partialorder (%p1667_p1), %v619_v10, 8.507059e+37 }
 0x351   : >> { %v505_v2 = vpop.xlane.xlu2 %504 }
 0x352   : >> { %v1655_v20 = vadd.f32 %v505_v2, %v502_v18   ;;  %v1828_v18 = vmov %v1605_v1  ;;  %v603_v1 = vand.u32 (%p1667_p1), 2147483647, %v1817_v7 }
 0x354   : >> { %v1821_v8 = vmov %v1655_v20  ;;  %vm1722_vm7 = vcmp.eq.f32.partialorder (%p1667_p1), %v603_v1, 8.507059e+37 }
 0x355   : >> { %v1830_v20 = vmov %v1821_v8  ;;  %1065 = vrcp.f32 (%p1667_p1), %v1821_v8  ;;  %vm631_vm8 = vweird.f32 (%p1667_p1), %v1821_v8  ;;  %v635_v40 = vand.u32 (%p1667_p1), 2147483647, %v1821_v8 }
 0x356   : > { %1067 = vrcp.f32 (%p1667_p1), %v1819_v61  ;;  %v596_v20 = vsub.f32 (%p1667_p1), 1.0, %v595_v37  ;;  %v637_v41 = vand.u32 (%p1667_p1), 2147483648, %v1821_v8 }
 0x357   : > { %vm636_vm3 = vcmp.eq.f32.partialorder (%p1667_p1), %v635_v40, 8.507059e+37 }
 0x358   : > { %v597_v31 = vmul.f32 (%p1667_p1), %v1062_v36, %v596_v20  ;;  %v638_v51 = vor.u32 (%p1667_p1), 1.1754944e-38, %v637_v41 }
 0x35a   : >> { %v462_v13 = vpop.f32.mrf.mxu3  ;;  %v598_v48 = vadd.f32 (%p1667_p1), %v1062_v36, %v597_v31 }
 0x35b   : >> { %v1658_v22 = vadd.f32 %v466_v9, %v462_v13  }
 0x35c   : > { %v602_v52 = vsel (%p1667_p1), %vm1734_vm12, %v1062_v36, %v598_v48 }
 0x35d   : >> { %v1822_v14 = vmov %v1658_v22 }
 0x35e   : >> { %v1832_v22 = vmov %v1822_v14 }
 0x35f   : > { %v622_v22 = vor.u32 (%p1667_p1), 1.1754944e-38, %v621_v35 }
 0x360   : >> { %v588_v27 = vpop.f32.mrf.mxu2 }
 0x361   : >> { %v1661_v16 = vadd.f32 %v592_v17, %v588_v27   ;;  %v1827_v17 = vmov %v1819_v61  ;;  %v1837_v27 = vmov %v1594_v53  ;;  %v1064_v53 = vpop.eup (%p1667_p1), %1063 }
 0x362   : >> { %v464_v29 = vpop.f32.mrf.mxu3  ;;  %v1066_v11 = vpop.eup (%p1667_p1), %1065  ;;  %vm616_vm10 = vweird.f32 (%p1667_p1), %v1064_v53 }
 0x363   : >> { %v1823_v28 = vmov %v1661_v16  ;;  %v627_v25 = vmul.f32 (%p1667_p1), %v1066_v11, %v1821_v8  ;;  %v1068_v38 = vpop.eup (%p1667_p1), %1067  ;;  %vm632_vm11 = vweird.f32 (%p1667_p1), %v1066_v11  ;;  %vm1743_vm14 = vmor (%p1667_p1), %vm615_vm6, %vm616_vm10 }
 0x364   : >> { %v1826_v16 = vmov %v1823_v28  ;;  %v643_v43 = vmul.f32 (%p1667_p1), %v1068_v38, %v1819_v61  ;;  %vm648_vm15 = vweird.f32 (%p1667_p1), %v1068_v38  ;;  %vm1749_vm2 = vmor (%p1667_p1), %vm631_vm8, %vm632_vm11 }
 0x365   : > { %v606_v16 = vor.u32 (%p1667_p1), 1.1754944e-38, %v605_v34  ;;  %v628_v42 = vsub.f32 (%p1667_p1), 1.0, %v627_v25  ;;  %vm649_vm4 = vmor (%p1667_p1), %vm647_vm13, %vm648_vm15 }
 0x366   : > { %v644_v50 = vsub.f32 (%p1667_p1), 1.0, %v643_v43 }
 0x367   : > { %v607_v56 = vsel (%p1667_p1), %vm1722_vm7, %v606_v16, %v602_v52 }
 0x368   : >> { %v590_v30 = vpop.f32.mrf.mxu2  ;;  %v645_v55 = vmul.f32 (%p1667_p1), %v1068_v38, %v644_v50  ;;  %v608_v59 = vmul.f32 (%p1667_p1), %v607_v56, %v1818_v12 }
 0x36a   : >> { %v525_v32 = vpop.f32.mrf.mxu3  ;;  %v646_v63 = vadd.f32 (%p1667_p1), %v1068_v38, %v645_v55 }
 0x36b   : >> { %v1664_v19 = vadd.f32 %v529_v23, %v525_v32   ;;  %v1833_v23 = vmov %v1820_v5 }
 0x36c   : > { %v650_v4 = vsel (%p1667_p1), %vm649_vm4, %v1068_v38, %v646_v63 }
 0x36d   : >> { %v1824_v33 = vmov %v1664_v19  ;;  %v655_v12 = vsel (%p1667_p1), %vm652_vm5, %v654_v58, %v650_v4 }
 0x36e   : >> { %v1829_v19 = vmov %v1824_v33  ;;  %v656_v6 = vmul.f32 (%p1667_p1), %v655_v12, %v1823_v28 }
 0x36f   : > { %315 = sbr.rel (!%p1667_p1) target bundleno = 176 (0xb0), region = 98  ;;  %v611_v19 = vmul.f32 (%p1667_p1), %v1064_v53, %v1820_v5 }
 0x371   : > { %v612_v39 = vsub.f32 (%p1667_p1), 1.0, %v611_v19 }
 0x372   : >> { %v527_v26 = vpop.f32.mrf.mxu3 }
 0x373   : >> { %v1836_v26 = vmov %v1817_v7  ;;  %v613_v45 = vmul.f32 (%p1667_p1), %v1064_v53, %v612_v39  ;;  %v629_v7 = vmul.f32 (%p1667_p1), %v1066_v11, %v628_v42 }
 0x375   : > { %v614_v21 = vadd.f32 %v1064_v53, %v613_v45  ;;  %v630_v54 = vadd.f32 %v1066_v11, %v629_v7 }
 0x377   : > { %v618_v57 = vsel %vm1743_vm14, %v1064_v53, %v614_v21  ;;  %v634_v62 = vsel %vm1749_vm2, %v1066_v11, %v630_v54 }
 0x378   : > { %v623_v60 = vsel %vm620_vm0, %v622_v22, %v618_v57  ;;  %v639_v3 = vsel %vm636_vm3, %v638_v51, %v634_v62 }
 0x379   : > { %v624_v0 = vmul.f32 %v623_v60, %v1822_v14  ;;  %v640_v61 = vmul.f32 %v639_v3, %v1824_v33 }
 0x37b   : > { %v625_v5 = vadd.f32 %v624_v0, %v608_v59 }
 0x37d   : > { %v641_v18 = vadd.f32 %v640_v61, %v625_v5 }
 0x37f   : > { %v657_v2 = vadd.f32 %v656_v6, %v641_v18 }
 0x381   : > { %659 = vst.msk [vmem:[%s1498_s19] sm:$0xff] %vm337_vm1, %v657_v2 }
 0x382   : > { %1186 = shalt.err (!%p1183_p2)
}
 0x383   : > { %859 = dma.vmem_to_hbm [thread:$0]  (%p1456_p0), %s675_s10, 128, %s677_s22, %s661_s18  }
 0x384 PF: > { %s688_s5 = sand.u32 1, %s1277_s12   ;;  %p873_p4 = pnand %p825_p6, %p1463_p5 }
 0x385   : > { %s689_s19 = scalar_lea.sflag [#allocation5], %s688_s5 }
 0x386   : > { %p874_p7 = pneg %p873_p4 }
 0x388   : > { %1272 = dma.done.wait (%p874_p7), %s689_s19, 128  }
 0x389   : > { %1274 = vsyncadd (%p874_p7), %s689_s19, 4294967168  ;;  %s20_s17 = sadd.s32 1, %s1297_s17   ;;  %s1846_s12 = smov %s1281_s13 }
 0x38a   : > { %p17_p11 = scmp.ge.s32.totalorder %s20_s17, 4   ;;  %s1847_s13 = smov %s1285_s14 }
 0x38b   : > { %s1848_s14 = smov %s1461_s20  ;;  %s1849_s15 = smov %s1293_s16 }
 0x38c   : > { %s1850_s16 = smov %s1852_s6  ;;  %19 = sbr.rel (!%p17_p11) target bundleno = 7 (0x7), region = 109 }
 0x391   :  { %695 = vsyncpa [#allocation4], 1 }
 0x392   :  { %697 = vsyncpa [#allocation4 + $0x1], 1 }
 0x393   :  { %698 = vsyncpa [#allocation7], 1 }
 0x394   :  { %699 = vsyncpa [#allocation5], 1 }
 0x395   :  { %701 = vsyncpa [#allocation5 + $0x1], 1 }

</bundles_post_ra>
